<compile_context>
chip_gen: v7x
topology: tpu7x:2x2x1
jax: 0.10.0
libtpu: 0.0.40
codegen_flags: <defaults>
</compile_context>

<pallas_src>
import jax
import jax.numpy as jnp
from jax.experimental import pallas as pl
from jax.experimental.pallas import tpu as pltpu

# ---- model geometry ---------------------------------------------------------
W_IN = 5                     # input width
C_OUT = 32                   # conv output channels
K = 3                        # conv kernel width
W_OUT = W_IN - K + 1         # 3 conv output positions
FLAT = C_OUT * W_OUT         # 96  (flattened conv features)
H1 = 64                      # fc1 hidden
H2 = 1                       # fc2 output

# ---- kernel-layout constants ------------------------------------------------
LANES = 128                  # lane-full width for all intermediates
A_ROWS = 8                   # folded conv operand rows (5 weights + 1 bias + pad)
BIAS_ROW = W_IN              # row 5 of A: conv bias (+ const-1 at lane ONE_H0)
ONE_H0 = FLAT                # lane 96: constant-1 lane of h0 (ReLU(1)=1)
ONE_H1 = H1                  # lane 64: constant-1 lane of h1
TM_MAX = 1024                # max batch-tile rows per grid step (all chips)


def _round_up(a, m):
    return ((a + m - 1) // m) * m


def _cdiv(a, b):
    return -(-a // b)


def simple_cnn_kernel(x_ref, a_ref, w1_ref, w2_ref, out_ref):
    # x_ref : (TM, 5)     raw input tile
    # a_ref : (8, 128)    rows 0..4: folded conv-as-matmul; row 5: conv bias
    #                     (channel-major) + constant 1 at lane 96; rows 6..7: 0
    # w1_ref: (128, 128)  fc1 weights (w1^T in [0:96,0:64], b1 in row 96,
    #                     const-1 column at lane 64)
    # w2_ref: (1, 128)    fc2 row (weights in lanes 0..63, b2 at lane 64)
    # out_ref: (1, TM)    sigmoid logits, batch packed on lanes
    x = x_ref[...]

    # conv(1x3) + channel-major flatten as one matmul; bias via broadcast add.
    h0 = jnp.dot(x, a_ref[:W_IN, :], preferred_element_type=jnp.float32)
    h0 = jnp.maximum(h0 + a_ref[BIAS_ROW:BIAS_ROW + 1, :], 0.0)

    # fc1 + bias + ReLU (lane-full MXU matmul; bias/const-1 carried by lane 96)
    h1 = jnp.maximum(
        jnp.dot(h0, w1_ref[...], preferred_element_type=jnp.float32), 0.0)

    # fc2 + bias with batch on lanes: (1,128) x (TM,128)^T -> (1, TM)
    logits = jax.lax.dot_general(
        w2_ref[...], h1, (((1,), (1,)), ((), ())),
        preferred_element_type=jnp.float32)

    # sigmoid (exp on EUP); lane-dense store (no broadcast slab)
    out_ref[...] = 1.0 / (1.0 + jnp.exp(-logits))


def prepare_params(params):
    """One-time folding of the PyTorch parameters into lane-full kernel operands."""
    wc, bc, w1, b1, w2, b2 = params
    wc2 = wc[:, 0, 0, :].astype(jnp.float32)                        # (32, 3)

    # A[i, c*3 + j] = wc2[c, i - j]  (zero otherwise): conv-as-matmul, exact.
    A = jnp.zeros((A_ROWS, LANES), jnp.float32)
    c_idx = jnp.arange(C_OUT)
    for j in range(W_OUT):
        for k in range(K):
            A = A.at[j + k, c_idx * K + j].set(wc2[:, k])
    # conv bias, channel-major ([b0,b0,b0,b1,b1,b1,...]) in the bias row
    A = A.at[BIAS_ROW, :FLAT].set(jnp.repeat(bc.astype(jnp.float32), W_OUT))
    # constant 1 into h0 lane 96 (ReLU(1)=1) to carry fc1/fc2 biases forward
    A = A.at[BIAS_ROW, ONE_H0].set(1.0)

    # fc1: (128, 128) with w1^T in [0:96, 0:64], b1 in row 96, const-1 lane 64
    W1 = jnp.zeros((LANES, LANES), jnp.float32)
    W1 = W1.at[:FLAT, :H1].set(w1.T.astype(jnp.float32))
    W1 = W1.at[ONE_H0, :H1].set(b1.astype(jnp.float32))
    W1 = W1.at[ONE_H0, ONE_H1].set(1.0)

    # fc2 row: weights in lanes [0:64], b2 in lane 64
    W2 = jnp.zeros((1, LANES), jnp.float32)
    W2 = W2.at[0, :H1].set(w2[0].astype(jnp.float32))
    W2 = W2.at[0, ONE_H1].set(b2[0].astype(jnp.float32))
    return A, W1, W2


def simple_cnn_forward(x, prepared):
    """x: (B, 1, 5) float32, prepared = prepare_params(params) -> (B, 1) float32."""
    A, W1, W2 = prepared
    batch = x.shape[0]
    x2 = x[:, 0, :].astype(jnp.float32)                             # (B, 5)

    # Batch tiling:
    #  * small batches: single tile (sublane-rounded) -> minimal padding.
    #  * large batches: >= 2 grid steps (v7x megacore), tm a multiple of 128 so
    #    the lane-packed output block is lane-aligned, tm <= TM_MAX.
    if batch <= 2 * LANES:
        tm = _round_up(batch, 8)
        b_pad = tm
    else:
        n_tiles = max(2, _cdiv(batch, TM_MAX))
        tm = min(TM_MAX, _round_up(_cdiv(batch, n_tiles), LANES))
        b_pad = _round_up(batch, tm)
    if b_pad != batch:
        x2 = jnp.pad(x2, ((0, b_pad - batch), (0, 0)))

    out_full = pl.pallas_call(
        simple_cnn_kernel,
        out_shape=jax.ShapeDtypeStruct((1, b_pad), jnp.float32),
        grid=(b_pad // tm,),
        in_specs=[
            pl.BlockSpec((tm, W_IN), lambda i: (i, 0)),       # x tile (batch-tiled)
            pl.BlockSpec((A_ROWS, LANES), lambda i: (0, 0)),  # folded conv (resident)
            pl.BlockSpec((LANES, LANES), lambda i: (0, 0)),   # fc1 (resident)
            pl.BlockSpec((1, LANES), lambda i: (0, 0)),       # fc2 row (resident)
        ],
        out_specs=pl.BlockSpec((1, tm), lambda i: (0, i)),    # lane-packed logits
        compiler_params=pltpu.CompilerParams(
            dimension_semantics=("parallel",)),               # split batch across TCs
    )(x2, A, W1, W2)

    # contiguous slice of the lane axis, then reshape to (B, 1)
    return out_full[0, :batch].reshape(batch, H2)


def init_params(key):
    ks = jax.random.split(key, 6)
    wc = jax.random.normal(ks[0], (C_OUT, 1, 1, K), jnp.float32) * 0.2
    bc = jax.random.normal(ks[1], (C_OUT,), jnp.float32) * 0.1
    w1 = jax.random.normal(ks[2], (H1, FLAT), jnp.float32) * 0.1
    b1 = jax.random.normal(ks[3], (H1,), jnp.float32) * 0.1
    w2 = jax.random.normal(ks[4], (H2, H1), jnp.float32) * 0.1
    b2 = jax.random.normal(ks[5], (H2,), jnp.float32) * 0.1
    return wc, bc, w1, b1, w2, b2


def reference_forward(x, params):
    """Pure-JAX reference mirroring the PyTorch ops literally."""
    wc, bc, w1, b1, w2, b2 = params
    wc2 = wc[:, 0, 0, :]                                     # (32, 3)
    x2 = x[:, 0, :]                                          # (B, 5)
    patches = jnp.stack([x2[:, j:j + K] for j in range(W_OUT)], axis=1)  # (B, 3, 3)
    conv = jnp.einsum("bjk,ck->bcj", patches, wc2) + bc[None, :, None]
    flat = jnp.maximum(conv, 0.0).reshape(x.shape[0], FLAT)  # channel-major flatten
    h1 = jnp.maximum(flat @ w1.T + b1, 0.0)
    return jax.nn.sigmoid(h1 @ w2.T + b2)


if __name__ == "__main__":
    key = jax.random.PRNGKey(0)
    kx, kp, kb, kc = jax.random.split(key, 4)
    params = init_params(kp)
    prepared = prepare_params(params)        # one-time weight folding

    # small-shape case consistent with the module (B=2, single tile)
    x_small = jax.random.normal(kx, (2, 1, W_IN), jnp.float32)
    out_small = jax.block_until_ready(simple_cnn_forward(x_small, prepared))
    ref_small = reference_forward(x_small, params)
    assert out_small.shape == (2, H2), out_small.shape
    assert jnp.allclose(out_small, ref_small, atol=1e-5, rtol=1e-5)

    # batched case exercising a multi-step grid (2 tiles of 256 rows)
    x_big = jax.random.normal(kb, (512, 1, W_IN), jnp.float32)
    out_big = jax.block_until_ready(simple_cnn_forward(x_big, prepared))
    ref_big = reference_forward(x_big, params)
    assert out_big.shape == (512, H2), out_big.shape
    assert jnp.allclose(out_big, ref_big, atol=1e-5, rtol=1e-5)

    # ragged batch exercising padding + lane-packed output slicing
    x_odd = jax.random.normal(kc, (777, 1, W_IN), jnp.float32)
    out_odd = jax.block_until_ready(simple_cnn_forward(x_odd, prepared))
    ref_odd = reference_forward(x_odd, params)
    assert out_odd.shape == (777, H2), out_odd.shape
    assert jnp.allclose(out_odd, ref_odd, atol=1e-5, rtol=1e-5)

    print("KERNEL_OK")
</pallas_src>

<mosaic_0001>
module attributes {stable_mosaic.version = 11 : i64} {
  func.func @simple_cnn_kernel(%arg0: i32, %arg1: memref<8x5xf32, #tpu.memory_space<vmem>>, %arg2: memref<8x128xf32, #tpu.memory_space<vmem>>, %arg3: memref<128x128xf32, #tpu.memory_space<vmem>>, %arg4: memref<1x128xf32, #tpu.memory_space<vmem>>, %arg5: memref<1x8xf32, #tpu.memory_space<vmem>>) attributes {dimension_semantics = [#tpu.dimension_semantics<parallel>], iteration_bounds = array<i64: 1>, scalar_prefetch = 0 : i64, scratch_operands = 0 : i64, tpu.core_type = #tpu.core_type<tc>, window_params = [{transform_indices = @transform_0, window_bounds = array<i64: 8, 5>}, {pipeline_mode = #tpu.pipeline_mode<synchronous>, transform_indices = @transform_1, window_bounds = array<i64: 8, 128>}, {pipeline_mode = #tpu.pipeline_mode<synchronous>, transform_indices = @transform_2, window_bounds = array<i64: 128, 128>}, {pipeline_mode = #tpu.pipeline_mode<synchronous>, transform_indices = @transform_3, window_bounds = array<i64: 1, 128>}, {transform_indices = @transform_4, window_bounds = array<i64: 1, 8>}]} {
    %c0 = arith.constant 0 : index
    %c0_0 = arith.constant 0 : index
    %0 = vector.load %arg1[%c0, %c0_0] : memref<8x5xf32, #tpu.memory_space<vmem>>, vector<8x5xf32>
    %c0_1 = arith.constant 0 : index
    %c0_2 = arith.constant 0 : index
    %1 = vector.load %arg2[%c0_1, %c0_2] : memref<8x128xf32, #tpu.memory_space<vmem>>, vector<5x128xf32>
    %cst = arith.constant dense<0.000000e+00> : vector<8x128xf32>
    %2 = tpu.matmul %0, %1, %cst {dimension_numbers = #tpu.dot_dimension_numbers<[1], [0], [0], [1], [0, 0, 1, 1], [], []>} : vector<8x5xf32>, vector<5x128xf32>, vector<8x128xf32> -> vector<8x128xf32>
    %c5 = arith.constant 5 : index
    %c0_3 = arith.constant 0 : index
    %3 = vector.load %arg2[%c5, %c0_3] : memref<8x128xf32, #tpu.memory_space<vmem>>, vector<1x128xf32>
    %4 = vector.broadcast %3 : vector<1x128xf32> to vector<8x128xf32>
    %5 = arith.addf %2, %4 : vector<8x128xf32>
    %cst_4 = arith.constant 0.000000e+00 : f32
    %6 = vector.broadcast %cst_4 : f32 to vector<8x128xf32>
    %7 = arith.maximumf %5, %6 : vector<8x128xf32>
    %c0_5 = arith.constant 0 : index
    %c0_6 = arith.constant 0 : index
    %8 = vector.load %arg3[%c0_5, %c0_6] : memref<128x128xf32, #tpu.memory_space<vmem>>, vector<128x128xf32>
    %cst_7 = arith.constant dense<0.000000e+00> : vector<8x128xf32>
    %9 = tpu.matmul %7, %8, %cst_7 {dimension_numbers = #tpu.dot_dimension_numbers<[1], [0], [0], [1], [0, 0, 1, 1], [], []>} : vector<8x128xf32>, vector<128x128xf32>, vector<8x128xf32> -> vector<8x128xf32>
    %cst_8 = arith.constant 0.000000e+00 : f32
    %10 = vector.broadcast %cst_8 : f32 to vector<8x128xf32>
    %11 = arith.maximumf %9, %10 : vector<8x128xf32>
    %c0_9 = arith.constant 0 : index
    %c0_10 = arith.constant 0 : index
    %12 = vector.load %arg4[%c0_9, %c0_10] : memref<1x128xf32, #tpu.memory_space<vmem>>, vector<1x128xf32>
    %cst_11 = arith.constant dense<0.000000e+00> : vector<1x8xf32>
    %13 = tpu.matmul %12, %11, %cst_11 {dimension_numbers = #tpu.dot_dimension_numbers<[1], [1], [0], [0], [0, 0, 1, 0], [], []>} : vector<1x128xf32>, vector<8x128xf32>, vector<1x8xf32> -> vector<1x8xf32>
    %cst_12 = arith.constant 0.000000e+00 : f32
    %14 = vector.broadcast %cst_12 : f32 to vector<1x8xf32>
    %15 = arith.subf %14, %13 : vector<1x8xf32>
    %16 = math.exp %15 : vector<1x8xf32>
    %cst_13 = arith.constant 1.000000e+00 : f32
    %17 = vector.broadcast %cst_13 : f32 to vector<1x8xf32>
    %18 = arith.addf %17, %16 : vector<1x8xf32>
    %cst_14 = arith.constant 1.000000e+00 : f32
    %19 = vector.broadcast %cst_14 : f32 to vector<1x8xf32>
    %20 = arith.divf %19, %18 : vector<1x8xf32>
    %c0_15 = arith.constant 0 : index
    %c0_16 = arith.constant 0 : index
    %21 = vector.load %arg5[%c0_15, %c0_16] : memref<1x8xf32, #tpu.memory_space<vmem>>, vector<1x8xf32>
    tpu.vector_store %arg5[%c0_15, %c0_16], %20 {strides = array<i32>} : memref<1x8xf32, #tpu.memory_space<vmem>>, vector<1x8xf32>,
    return
  }
  func.func @transform_0(%arg0: i32) -> (i32, i32) {
    %c0_i32 = arith.constant 0 : i32
    %c0_i32_0 = arith.constant 0 : i32
    return %arg0, %c0_i32 : i32, i32
  }
  func.func @transform_1(%arg0: i32) -> (i32, i32) {
    %c0_i32 = arith.constant 0 : i32
    %c0_i32_0 = arith.constant 0 : i32
    %c0_i32_1 = arith.constant 0 : i32
    return %c0_i32, %c0_i32_0 : i32, i32
  }
  func.func @transform_2(%arg0: i32) -> (i32, i32) {
    %c0_i32 = arith.constant 0 : i32
    %c0_i32_0 = arith.constant 0 : i32
    %c0_i32_1 = arith.constant 0 : i32
    return %c0_i32, %c0_i32_0 : i32, i32
  }
  func.func @transform_3(%arg0: i32) -> (i32, i32) {
    %c0_i32 = arith.constant 0 : i32
    %c0_i32_0 = arith.constant 0 : i32
    %c0_i32_1 = arith.constant 0 : i32
    return %c0_i32, %c0_i32_0 : i32, i32
  }
  func.func @transform_4(%arg0: i32) -> (i32, i32) {
    %c0_i32 = arith.constant 0 : i32
    %c0_i32_0 = arith.constant 0 : i32
    return %c0_i32, %arg0 : i32, i32
  }
}

</mosaic_0001>

<bundles_post_ra>
// kernel: tpu_custom_call.1
= control target key start
LH: loop header
LB: loop body
LE: loop exit
PB: predicated region body
PF: predicated region fallthrough
CT: control target
= control target key end

     0   :  { %9 = vsyncpa [#allocation3], 0  ;;  %s611_s0 = inlined_call_operand.hbm [shape: f32[8,5], index: 0, kind: input, shape index: {}]   ;;  %s612_s1 = inlined_call_operand.hbm [shape: f32[8,128], index: 1, kind: input, shape index: {}]   ;;  %s613_s2 = inlined_call_operand.hbm [shape: f32[128,128], index: 2, kind: input, shape index: {}]   ;;  %s614_s3 = inlined_call_operand.vmem [shape: f32[1,128], index: 3, kind: input, shape index: {}]   ;;  %s615_s4 = inlined_call_operand.hbm [shape: f32[1,8], index: 4, kind: output, shape index: {}]  }
   0x1   :  { %10 = vsyncpa [#allocation6], 0 }
   0x2   :  { %11 = vsyncpa [#allocation4], 0  ;;  %s523_s15 = smov [#allocation5]   ;;  %s524_s17 = smov [#allocation2]  }
   0x3   :  { %s28_s16 = sshll.u32 %s523_s15, 4  ;;  %s18_s18 = sshll.u32 %s524_s17, 4  ;;  %s29_s16 = int_to_ptr.vmem [resolvable:$true] %s28_s16  ;;  %s19_s18 = int_to_ptr.vmem [resolvable:$true] %s18_s18 }
   0x4   :  { %s429_s21 = scalar_lea.hbm %s612_s1, 128 }
   0x5   :  { %p430_p0 = scmp.ne.s32.totalorder %s612_s1, %s429_s21  ;;  %p433_p1 = scmp.lt.u32.totalorder %s429_s21, %s612_s1 }
   0x7   :  { %p435_p2 = pnand %p433_p1, %p430_p0 }
   0x9   :  { %438 = shalt.err (!%p435_p2)
}
   0xa   :  { %s439_s26 = scalar_lea.vmem %s29_s16, 128  ;;  %p444_p4 = scmp.lt.s32.totalorder %s29_s16, %s29_s16 }
   0xb   :  { %p440_p3 = scmp.ne.s32.totalorder %s29_s16, %s439_s26  ;;  %p445_p5 = scmp.lt.s32.totalorder %s439_s26, %s439_s26 }
   0xd   :  { %p446_p6 = por %p445_p5, %p444_p4 }
   0xf   :  { %p447_p7 = pnand %p446_p6, %p440_p3 }
  0x11   :  { %450 = shalt.err (!%p447_p7)
}
  0x12   :  { %31 = dma.hbm_to_vmem [thread:$0]  %s612_s1, 128, %s29_s16, [#allocation6]  }
  0x13   :  { %s451_s5 = scalar_lea.hbm %s611_s0, 128 }
  0x14   :  { %p452_p8 = scmp.ne.s32.totalorder %s611_s0, %s451_s5  ;;  %p455_p9 = scmp.lt.u32.totalorder %s451_s5, %s611_s0 }
  0x16   :  { %p457_p10 = pnand %p455_p9, %p452_p8 }
  0x18   :  { %460 = shalt.err (!%p457_p10)
}
  0x19   :  { %s461_s10 = scalar_lea.vmem %s19_s18, 128  ;;  %p466_p12 = scmp.lt.s32.totalorder %s19_s18, %s19_s18 }
  0x1a   :  { %p462_p11 = scmp.ne.s32.totalorder %s19_s18, %s461_s10  ;;  %p467_p13 = scmp.lt.s32.totalorder %s461_s10, %s461_s10 }
  0x1c   :  { %p468_p0 = por %p467_p13, %p466_p12 }
  0x1e   :  { %p469_p1 = pnand %p468_p0, %p462_p11 }
  0x20   :  { %472 = shalt.err (!%p469_p1)
}
  0x21   :  { %21 = dma.hbm_to_vmem [thread:$0]  %s611_s0, 128, %s19_s18, [#allocation3]  }
  0x22   :  { %s525_s12 = smov [#allocation7]   ;;  %s473_s16 = scalar_lea.hbm %s613_s2, 2048 }
  0x23   :  { %s37_s13 = sshll.u32 %s525_s12, 4  ;;  %p474_p2 = scmp.ne.s32.totalorder %s613_s2, %s473_s16  ;;  %s38_s13 = int_to_ptr.vmem [resolvable:$true] %s37_s13 }
  0x24   :  { %p477_p3 = scmp.lt.u32.totalorder %s473_s16, %s613_s2 }
  0x26   :  { %p479_p4 = pnand %p477_p3, %p474_p2 }
  0x28   :  { %482 = shalt.err (!%p479_p4)
}
  0x29   :  { %s483_s22 = scalar_lea.vmem %s38_s13, 2048  ;;  %p488_p6 = scmp.lt.s32.totalorder %s38_s13, %s38_s13 }
  0x2a   :  { %p484_p5 = scmp.ne.s32.totalorder %s38_s13, %s483_s22  ;;  %p489_p7 = scmp.lt.s32.totalorder %s483_s22, %s483_s22 }
  0x2c   :  { %p490_p8 = por %p489_p7, %p488_p6 }
  0x2e   :  { %p491_p9 = pnand %p490_p8, %p484_p5 }
  0x30   :  { %494 = shalt.err (!%p491_p9)
}
  0x31   :  { %s526_s0 = smov 128   ;;  %s527_s18 = smov 8  }
  0x32   :  { %43 = dma.hbm_to_vmem [thread:$0]  %s613_s2, 2048, %s38_s13, [#allocation6], %s526_s0, %s526_s0, %s527_s18  }
  0x33   :  { %517 = dma.done.wait [#allocation3], 128  }
  0x34   :  { %518 = vsyncadd [#allocation3], 4294967168 }
  0x35   :  { %519 = dma.done.wait [#allocation6], 2176  }
  0x36   :  { %520 = vsyncadd [#allocation6], 4294965120  ;;  %v528_v0 = vmov 0.0   ;;  %vm529_vm0 = vmmov 0   ;;  %v530_v1 = vmov 0.0|0.0   ;;  %vm66_vm1 = vcmask 1044480  }
  0x37   :  { %347 = vmatprep.subr.mxu0 %v528_v0  ;;  %349 = vmatprep.mubr.msk.f32.mxu0 %vm529_vm0, %v528_v0  ;;  %vm62_vm2 = vcmask 39936   ;;  %v56_v2 = vld [vmem:[#allocation5] sm:$0x1f]  ;;  %v55_v3 = vld [vmem:[#allocation2] sm:$0xff]  ;;  %v141_v4 = vld [vmem:[#allocation7] sm:$0xff]  ;;  %s531_s26 = smov [#allocation8]  }
  0x38   :  { %392 = vmatprep.subr.bf16.mxu1 %v530_v1  ;;  %384 = vmatprep.mubr.msk.f32.mxu1 %vm529_vm0, %v528_v0  ;;  %v142_v5 = vld [vmem:[#allocation7 + $0x8] sm:$0xff]  ;;  %v143_v6 = vld [vmem:[#allocation7 + $0x10] sm:$0xff]  ;;  %v144_v7 = vld [vmem:[#allocation7 + $0x18] sm:$0xff]  ;;  %s313_s27 = sshll.u32 %s531_s26, 4  ;;  %vm305_vm3 = vcmask 57344   ;;  %s314_s27 = int_to_ptr.vmem [resolvable:$true] %s313_s27 }
  0x39   :  { %348 = vmatpush3.msk.msra.mxu0 %vm66_vm1, %v56_v2  ;;  %v393_v8 = vpack.c.bf16 %v142_v5, %v141_v4  ;;  %v396_v9 = vpack.c.bf16 %v144_v7, %v143_v6  ;;  %v145_v10 = vld [vmem:[#allocation7 + $0x20] sm:$0xff]  ;;  %v146_v11 = vld [vmem:[#allocation7 + $0x28] sm:$0xff]  ;;  %v147_v13 = vld [vmem:[#allocation7 + $0x30] sm:$0xff]  ;;  %s495_s28 = scalar_lea.vmem %s314_s27, 16  ;;  %s499_s29 = scalar_lea.vmem %s314_s27, 32 }
  0x3a   :  { %350 = vmatmul.mubr.msk.f32.vlgmr.msra.gmra.mrb[0].mxu0 %vm62_vm2, %v55_v3  ;;  %387 = vmatprep.subr.mxu0 %v528_v0  ;;  %v399_v12 = vpack.c.bf16 %v146_v11, %v145_v10  ;;  %v148_v14 = vld [vmem:[#allocation7 + $0x38] sm:$0xff]  ;;  %v149_v16 = vld [vmem:[#allocation7 + $0x40] sm:$0xff]  ;;  %v150_v17 = vld [vmem:[#allocation7 + $0x48] sm:$0xff]  ;;  %p496_p10 = scmp.ne.s32.totalorder %s314_s27, %s495_s28  ;;  %p500_p11 = scmp.lt.s32.totalorder %s314_s27, %s314_s27 }
  0x3b   :  { %389 = vmatprep.mubr.msk.f32.mxu0 %vm529_vm0, %v528_v0  ;;  %394 = vmatpush3.bf16.msra.mxu1 %v393_v8  ;;  %v402_v15 = vpack.c.bf16 %v148_v14, %v147_v13  ;;  %v405_v18 = vpack.c.bf16 %v150_v17, %v149_v16  ;;  %v151_v19 = vld [vmem:[#allocation7 + $0x50] sm:$0xff]  ;;  %v152_v20 = vld [vmem:[#allocation7 + $0x58] sm:$0xff]  ;;  %v153_v22 = vld [vmem:[#allocation7 + $0x60] sm:$0xff]  ;;  %p501_p12 = scmp.lt.s32.totalorder %s499_s29, %s495_s28 }
  0x3c   :  { %395 = vmatprep.subr.bf16.mxu1 %v530_v1  ;;  %v408_v21 = vpack.c.bf16 %v152_v20, %v151_v19  ;;  %v154_v23 = vld [vmem:[#allocation7 + $0x68] sm:$0xff]  ;;  %v155_v25 = vld [vmem:[#allocation7 + $0x70] sm:$0xff]  ;;  %v156_v26 = vld [vmem:[#allocation7 + $0x78] sm:$0xff] }
  0x3d   :  { %v411_v24 = vpack.c.bf16 %v154_v23, %v153_v22  ;;  %v414_v27 = vpack.c.bf16 %v156_v26, %v155_v25  ;;  %v323_v28 = vld [vmem:[#allocation5 + $0x5] ss:$0 sm:$0xff]  ;;  %v228_v36 = vld [vmem:[%s614_s3] sm:$0x1]  ;;  %p502_p13 = por %p501_p12, %p500_p11 }
  0x3f   :  { %397 = vmatpush3.bf16.msra.mxu1 %v396_v9  ;;  %p503_p0 = pnand %p502_p13, %p496_p10 }
  0x40   :  { %398 = vmatprep.subr.bf16.mxu1 %v530_v1 }
  0x43   :  { %400 = vmatpush3.bf16.msra.mxu1 %v399_v12 }
  0x44   :  { %401 = vmatprep.subr.bf16.mxu1 %v530_v1 }
  0x47   :  { %403 = vmatpush3.bf16.msra.mxu1 %v402_v15 }
  0x48   :  { %404 = vmatprep.subr.bf16.mxu1 %v530_v1 }
  0x4b   :  { %406 = vmatpush3.bf16.msra.mxu1 %v405_v18 }
  0x4c   :  { %407 = vmatprep.subr.bf16.mxu1 %v530_v1 }
  0x4f   :  { %409 = vmatpush3.bf16.msra.mxu1 %v408_v21 }
  0x50   :  { %410 = vmatprep.subr.bf16.mxu1 %v530_v1 }
  0x53   :  { %412 = vmatpush3.bf16.msra.mxu1 %v411_v24 }
  0x54   :  { %413 = vmatprep.subr.bf16.mxu1 %v530_v1 }
  0x57   :  { %415 = vmatpush3.bf16.msra.mxu1 %v414_v27 }
 0x10d   :  { %v136_v29 = vpop.f32.mrb[0].mxu0 }
 0x10e   :  { %v137_v30 = vadd.f32 %v323_v28, %v136_v29  ;;  %v351_v31 = vpop.f32.mrb[1].mxu0 }
 0x110   :  { %v140_v32 = vmax.f32 %v137_v30, 0.0 }
 0x112   :  { %385 = vmatmul.mubr.f32.vlgmr.msra.gmra.mrb[0].mxu1 %v140_v32 }
 0x1e5   :  { %v223_v33 = vpop.f32.mrb[0].mxu1 }
 0x1e6   :  { %v227_v34 = vmax.f32 %v223_v33, 0.0  ;;  %v386_v35 = vpop.f32.mrb[1].mxu1 }
 0x1e8   :  { %388 = vmatpush3.xpose.msra.mxu0 %v227_v34 }
 0x1eb   :  { %390 = vmatmul.mubr.f32.vlgmr.msra.gmra.mrb[2].mxu0 %v228_v36 }
 0x2be   :  { %v295_v37 = vpop.f32.mrb[2].mxu0 }
 0x2bf   :  { %v299_v38 = vsub.f32 0.0, %v295_v37  ;;  %v391_v39 = vpop.f32.mrb[3].mxu0 }
 0x2c1   :  { %v300_v40 = vmul.f32 1.442695, %v299_v38 }
 0x2c3   :  { %425 = vpow2.f32 %v300_v40 }
 0x2cd   :  { %v426_v41 = vpop.eup %425 }
 0x2ce   :  { %v302_v42 = vadd.f32 1.0, %v426_v41 }
 0x2d0   :  { %427 = vrcp.f32 %v302_v42 }
 0x2da   :  { %v428_v43 = vpop.eup %427 }
 0x2db   :  { %306 = vst.msk [vmem:[#allocation8] sm:$0x1] %vm305_vm3, %v428_v43 }
 0x2dc   :  { %506 = shalt.err (!%p503_p0)
}
 0x2dd   :  { %s507_s5 = scalar_lea.hbm %s615_s4, 16 }
 0x2de   :  { %p508_p1 = scmp.ne.s32.totalorder %s615_s4, %s507_s5  ;;  %p511_p2 = scmp.lt.u32.totalorder %s507_s5, %s615_s4 }
 0x2e0   :  { %p513_p3 = pnand %p511_p2, %p508_p1 }
 0x2e2   :  { %516 = shalt.err (!%p513_p3)
}
 0x2e3   :  { %316 = dma.vmem_to_hbm [thread:$0]  %s314_s27, 16, %s615_s4, [#allocation4]  }
 0x2e4   :  { %521 = dma.done.wait [#allocation4], 16  }
 0x2e5   :  { %522 = vsyncadd [#allocation4], 4294967280 }
 0x2e6   :  { %320 = vsyncpa [#allocation3], 1 }
 0x2e7   :  { %321 = vsyncpa [#allocation6], 1 }
 0x2e8   :  { %322 = vsyncpa [#allocation4], 1 }

</bundles_post_ra>
